<compile_context>
chip_gen: v7x
topology: tpu7x:2x2x1
jax: 0.10.0
libtpu: 0.0.40
codegen_flags: <defaults>
</compile_context>

<pallas_src>
import jax
import jax.numpy as jnp
from jax.experimental import pallas as pl
from jax.experimental.pallas import tpu as pltpu

_LANE = 128
_SUB = 8
_MAX_BLOCK_ROWS = 2048  # 2048*128*4B = 1 MiB per f32 buffer


def _round_up(x, m):
    return ((x + m - 1) // m) * m


def _wavg_kernel(w_ref, x1_ref, x2_ref, x3_ref, o_ref):
    # w_ref: SMEM (3,) f32 softmax weights (read once per grid step;
    # scalar slots are otherwise idle so this is free).
    w0 = w_ref[0]
    w1 = w_ref[1]
    w2 = w_ref[2]
    acc = (x1_ref[...].astype(jnp.float32) * w0
           + x2_ref[...].astype(jnp.float32) * w1
           + x3_ref[...].astype(jnp.float32) * w2)
    o_ref[...] = acc.astype(o_ref.dtype)


def weighted_average3(x1, x2, x3, log_weights):
    """x1, x2, x3: same-shape arrays (e.g. NCHW); log_weights: (3,) float32."""
    assert x1.shape == x2.shape == x3.shape
    assert x1.dtype == x2.dtype == x3.dtype
    orig_shape = x1.shape
    dtype = x1.dtype

    # Parameter glue: softmax over the 3 log-weights (matches torch.softmax).
    # Tiny (3-element) op; kept outside the kernel.
    weights = jax.nn.softmax(log_weights.astype(jnp.float32), axis=0)

    total = 1
    for d in orig_shape:
        total *= d

    # Lane-dense layout: (rows, 128). Round rows up to a multiple of the
    # block size so grid * block_rows == rows exactly (no dropped tail).
    rows_raw = pl.cdiv(total, _LANE)
    block_rows = min(_MAX_BLOCK_ROWS, _round_up(rows_raw, _SUB))
    rows = _round_up(rows_raw, block_rows)
    padded_total = rows * _LANE
    pad = padded_total - total

    def flat(x):
        xf = x.reshape(-1)
        if pad:
            # Only pay the padding copy when the shape actually requires it.
            xf = jnp.concatenate([xf, jnp.zeros((pad,), dtype)])
        return xf.reshape(rows, _LANE)

    x1f, x2f, x3f = flat(x1), flat(x2), flat(x3)

    grid = (rows // block_rows,)
    vmem_spec = pl.BlockSpec((block_rows, _LANE), lambda i: (i, 0))

    out = pl.pallas_call(
        _wavg_kernel,
        out_shape=jax.ShapeDtypeStruct((rows, _LANE), dtype),
        grid_spec=pltpu.PrefetchScalarGridSpec(
            num_scalar_prefetch=0,
            grid=grid,
            in_specs=[
                pl.BlockSpec(memory_space=pltpu.MemorySpace.SMEM),  # weights (3,)
                vmem_spec,
                vmem_spec,
                vmem_spec,
            ],
            out_specs=vmem_spec,
        ),
        compiler_params=pltpu.CompilerParams(
            dimension_semantics=("parallel",),
            # 4 streams x 2 buffers x <=1 MiB = <=8 MiB; set the limit
            # explicitly so it is safe on v5e (16 MiB default) and v7x
            # (64 MiB physical) alike.
            vmem_limit_bytes=32 * 1024 * 1024,
        ),
    )(weights, x1f, x2f, x3f)

    if pad:
        out = out.reshape(-1)[:total]
    return out.reshape(orig_shape)


if __name__ == "__main__":
    key = jax.random.PRNGKey(0)
    k1, k2, k3 = jax.random.split(key, 3)

    N, C, H, W = 2, 4, 16, 16
    x1 = jax.random.normal(k1, (N, C, H, W), dtype=jnp.float32)
    x2 = jax.random.normal(k2, (N, C, H, W), dtype=jnp.float32)
    x3 = jax.random.normal(k3, (N, C, H, W), dtype=jnp.float32)

    # Deterministic parameter init, matching the module's default:
    # initial_weights = [1.0, 1.0, 1.0] -> log_weights = log([1,1,1]) = zeros.
    log_weights = jnp.log(jnp.array([1.0, 1.0, 1.0], dtype=jnp.float32))

    out = weighted_average3(x1, x2, x3, log_weights)
    out = jax.block_until_ready(out)

    # Reference check (f32 path).
    w = jax.nn.softmax(log_weights)
    ref = x1 * w[0] + x2 * w[1] + x3 * w[2]
    assert out.shape == ref.shape and out.dtype == ref.dtype
    assert jnp.allclose(out, ref, atol=1e-6, rtol=1e-6)

    # Also exercise a ragged / bf16 case to cover the padded, native-dtype path.
    M = 5 * 7 * 13  # not a multiple of 128
    y1 = jax.random.normal(k1, (M,), dtype=jnp.bfloat16)
    y2 = jax.random.normal(k2, (M,), dtype=jnp.bfloat16)
    y3 = jax.random.normal(k3, (M,), dtype=jnp.bfloat16)
    out_b = jax.block_until_ready(weighted_average3(y1, y2, y3, log_weights))
    ref_b = (y1.astype(jnp.float32) * w[0] + y2.astype(jnp.float32) * w[1]
             + y3.astype(jnp.float32) * w[2]).astype(jnp.bfloat16)
    assert out_b.shape == ref_b.shape and out_b.dtype == jnp.bfloat16
    assert jnp.allclose(out_b.astype(jnp.float32), ref_b.astype(jnp.float32),
                        atol=2e-2, rtol=2e-2)

    print("KERNEL_OK")
</pallas_src>

<mosaic_0001>
module attributes {stable_mosaic.version = 11 : i64} {
  func.func @_wavg_kernel(%arg0: i32, %arg1: memref<3xf32, #tpu.memory_space<smem>>, %arg2: memref<16x128xf32, #tpu.memory_space<vmem>>, %arg3: memref<16x128xf32, #tpu.memory_space<vmem>>, %arg4: memref<16x128xf32, #tpu.memory_space<vmem>>, %arg5: memref<16x128xf32, #tpu.memory_space<vmem>>) attributes {dimension_semantics = [#tpu.dimension_semantics<parallel>], iteration_bounds = array<i64: 1>, scalar_prefetch = 0 : i64, scratch_operands = 0 : i64, tpu.core_type = #tpu.core_type<tc>, window_params = [{transform_indices = @transform_0, window_bounds = array<i64: 3>}, {transform_indices = @transform_1, window_bounds = array<i64: 16, 128>}, {transform_indices = @transform_2, window_bounds = array<i64: 16, 128>}, {transform_indices = @transform_3, window_bounds = array<i64: 16, 128>}, {transform_indices = @transform_4, window_bounds = array<i64: 16, 128>}]} {
    %c0 = arith.constant 0 : index
    %0 = memref.load %arg1[%c0] : memref<3xf32, #tpu.memory_space<smem>>
    %c1 = arith.constant 1 : index
    %1 = memref.load %arg1[%c1] : memref<3xf32, #tpu.memory_space<smem>>
    %c2 = arith.constant 2 : index
    %2 = memref.load %arg1[%c2] : memref<3xf32, #tpu.memory_space<smem>>
    %c0_0 = arith.constant 0 : index
    %c0_1 = arith.constant 0 : index
    %3 = vector.load %arg2[%c0_0, %c0_1] : memref<16x128xf32, #tpu.memory_space<vmem>>, vector<16x128xf32>
    %4 = vector.broadcast %0 : f32 to vector<16x128xf32>
    %5 = arith.mulf %3, %4 : vector<16x128xf32>
    %c0_2 = arith.constant 0 : index
    %c0_3 = arith.constant 0 : index
    %6 = vector.load %arg3[%c0_2, %c0_3] : memref<16x128xf32, #tpu.memory_space<vmem>>, vector<16x128xf32>
    %7 = vector.broadcast %1 : f32 to vector<16x128xf32>
    %8 = arith.mulf %6, %7 : vector<16x128xf32>
    %9 = arith.addf %5, %8 : vector<16x128xf32>
    %c0_4 = arith.constant 0 : index
    %c0_5 = arith.constant 0 : index
    %10 = vector.load %arg4[%c0_4, %c0_5] : memref<16x128xf32, #tpu.memory_space<vmem>>, vector<16x128xf32>
    %11 = vector.broadcast %2 : f32 to vector<16x128xf32>
    %12 = arith.mulf %10, %11 : vector<16x128xf32>
    %13 = arith.addf %9, %12 : vector<16x128xf32>
    %c0_6 = arith.constant 0 : index
    %c0_7 = arith.constant 0 : index
    %14 = vector.load %arg5[%c0_6, %c0_7] : memref<16x128xf32, #tpu.memory_space<vmem>>, vector<16x128xf32>
    tpu.vector_store %arg5[%c0_6, %c0_7], %13 {strides = array<i32>} : memref<16x128xf32, #tpu.memory_space<vmem>>, vector<16x128xf32>,
    return
  }
  func.func @transform_0(%arg0: i32) -> i32 {
    %c0_i32 = arith.constant 0 : i32
    %c0_i32_0 = arith.constant 0 : i32
    return %c0_i32 : i32
  }
  func.func @transform_1(%arg0: i32) -> (i32, i32) {
    %c0_i32 = arith.constant 0 : i32
    %c0_i32_0 = arith.constant 0 : i32
    return %arg0, %c0_i32 : i32, i32
  }
  func.func @transform_2(%arg0: i32) -> (i32, i32) {
    %c0_i32 = arith.constant 0 : i32
    %c0_i32_0 = arith.constant 0 : i32
    return %arg0, %c0_i32 : i32, i32
  }
  func.func @transform_3(%arg0: i32) -> (i32, i32) {
    %c0_i32 = arith.constant 0 : i32
    %c0_i32_0 = arith.constant 0 : i32
    return %arg0, %c0_i32 : i32, i32
  }
  func.func @transform_4(%arg0: i32) -> (i32, i32) {
    %c0_i32 = arith.constant 0 : i32
    %c0_i32_0 = arith.constant 0 : i32
    return %arg0, %c0_i32 : i32, i32
  }
}

</mosaic_0001>

<bundles_post_ra>
// kernel: tpu_custom_call.1
= control target key start
LH: loop header
LB: loop body
LE: loop exit
PB: predicated region body
PF: predicated region fallthrough
CT: control target
= control target key end

     0   :  { %9 = vsyncpa [#allocation5], 0  ;;  %s332_s0 = inlined_call_operand.hbm [shape: f32[3], index: 0, kind: input, shape index: {}]   ;;  %s333_s1 = inlined_call_operand.hbm [shape: f32[16,128], index: 1, kind: input, shape index: {}]   ;;  %s334_s2 = inlined_call_operand.hbm [shape: f32[16,128], index: 2, kind: input, shape index: {}]   ;;  %s335_s3 = inlined_call_operand.hbm [shape: f32[16,128], index: 3, kind: input, shape index: {}]   ;;  %s336_s4 = inlined_call_operand.hbm [shape: f32[16,128], index: 4, kind: output, shape index: {}]  }
   0x1   :  { %10 = vsyncpa [#allocation3], 0 }
   0x2   :  { %11 = vsyncpa [#allocation8], 0 }
   0x3   :  { %12 = vsyncpa [#allocation4], 0  ;;  %s228_s15 = smov [#allocation7]   ;;  %s229_s17 = smov [#allocation6]  }
   0x4   :  { %s38_s16 = sshll.u32 %s228_s15, 4  ;;  %s26_s18 = sshll.u32 %s229_s17, 4  ;;  %s39_s16 = int_to_ptr.vmem [resolvable:$true] %s38_s16  ;;  %s27_s18 = int_to_ptr.vmem [resolvable:$true] %s26_s18 }
   0x5   :  { %s122_s21 = scalar_lea.hbm %s334_s2, 256 }
   0x6   :  { %p123_p0 = scmp.ne.s32.totalorder %s334_s2, %s122_s21  ;;  %p126_p1 = scmp.lt.u32.totalorder %s122_s21, %s334_s2 }
   0x8   :  { %p128_p2 = pnand %p126_p1, %p123_p0 }
   0xa   :  { %131 = shalt.err (!%p128_p2)
}
   0xb   :  { %s132_s26 = scalar_lea.vmem %s39_s16, 256  ;;  %p137_p4 = scmp.lt.s32.totalorder %s39_s16, %s39_s16 }
   0xc   :  { %p133_p3 = scmp.ne.s32.totalorder %s39_s16, %s132_s26  ;;  %p138_p5 = scmp.lt.s32.totalorder %s132_s26, %s132_s26 }
   0xe   :  { %p139_p6 = por %p138_p5, %p137_p4 }
  0x10   :  { %p140_p7 = pnand %p139_p6, %p133_p3 }
  0x12   :  { %143 = shalt.err (!%p140_p7)
}
  0x13   :  { %s230_s27 = smov 128   ;;  %s231_s28 = smov 8  }
  0x14   :  { %44 = dma.hbm_to_vmem [thread:$0]  %s334_s2, 256, %s39_s16, [#allocation8], %s230_s27, %s230_s27, %s231_s28  }
  0x15   :  { %s144_s7 = scalar_lea.hbm %s332_s0, 16 }
  0x16   :  { %p145_p8 = scmp.ne.s32.totalorder %s332_s0, %s144_s7  ;;  %p148_p9 = scmp.lt.u32.totalorder %s144_s7, %s332_s0 }
  0x18   :  { %p150_p10 = pnand %p148_p9, %p145_p8 }
  0x1a   :  { %153 = shalt.err (!%p150_p10)
}
  0x1b   :  { %s232_s12 = smov [#allocation2]   ;;  %s154_s16 = scalar_lea.hbm %s333_s1, 256 }
  0x1c   :  { %20 = dma.hbm_to_smem %s332_s0, 16, %s232_s12, [#allocation5]  }
  0x1d   :  { %p155_p11 = scmp.ne.s32.totalorder %s333_s1, %s154_s16  ;;  %p158_p12 = scmp.lt.u32.totalorder %s154_s16, %s333_s1 }
  0x1f   :  { %p160_p13 = pnand %p158_p12, %p155_p11 }
  0x21   :  { %163 = shalt.err (!%p160_p13)
}
  0x22   :  { %s164_s22 = scalar_lea.vmem %s27_s18, 256  ;;  %p169_p1 = scmp.lt.s32.totalorder %s27_s18, %s27_s18 }
  0x23   :  { %p165_p0 = scmp.ne.s32.totalorder %s27_s18, %s164_s22  ;;  %p170_p2 = scmp.lt.s32.totalorder %s164_s22, %s164_s22 }
  0x25   :  { %p171_p3 = por %p170_p2, %p169_p1 }
  0x27   :  { %p172_p4 = pnand %p171_p3, %p165_p0 }
  0x29   :  { %175 = shalt.err (!%p172_p4)
}
  0x2a   :  { %32 = dma.hbm_to_vmem [thread:$0]  %s333_s1, 256, %s27_s18, [#allocation3], %s230_s27, %s230_s27, %s231_s28  }
  0x2b   :  { %s233_s24 = smov [#allocation9]   ;;  %s176_s30 = scalar_lea.hbm %s335_s3, 256 }
  0x2c   :  { %s50_s25 = sshll.u32 %s233_s24, 4  ;;  %p177_p5 = scmp.ne.s32.totalorder %s335_s3, %s176_s30  ;;  %s51_s25 = int_to_ptr.vmem [resolvable:$true] %s50_s25 }
  0x2d   :  { %p180_p6 = scmp.lt.u32.totalorder %s176_s30, %s335_s3 }
  0x2f   :  { %p182_p7 = pnand %p180_p6, %p177_p5 }
  0x31   :  { %185 = shalt.err (!%p182_p7)
}
  0x32   :  { %s186_s9 = scalar_lea.vmem %s51_s25, 256  ;;  %p191_p9 = scmp.lt.s32.totalorder %s51_s25, %s51_s25 }
  0x33   :  { %p187_p8 = scmp.ne.s32.totalorder %s51_s25, %s186_s9  ;;  %p192_p10 = scmp.lt.s32.totalorder %s186_s9, %s186_s9 }
  0x35   :  { %p193_p11 = por %p192_p10, %p191_p9 }
  0x37   :  { %p194_p12 = pnand %p193_p11, %p187_p8 }
  0x39   :  { %197 = shalt.err (!%p194_p12)
}
  0x3a   :  { %56 = dma.hbm_to_vmem [thread:$0]  %s335_s3, 256, %s51_s25, [#allocation8], %s230_s27, %s230_s27, %s231_s28  }
  0x3b   :  { %220 = dma.done.wait [#allocation5], 16  }
  0x3c   :  { %221 = vsyncadd [#allocation5], 4294967280 }
  0x3d   :  { %222 = dma.done.wait [#allocation3], 256  }
  0x3e   :  { %223 = vsyncadd [#allocation3], 4294967040 }
  0x3f   :  { %224 = dma.done.wait [#allocation8], 512  }
  0x40   :  { %225 = vsyncadd [#allocation8], 4294966784 }
  0x41   :  { %69 = sfence }
  0x42   :  { %s70_s10 = sld [smem:[#allocation2]]  ;;  %s113_s11 = sld [smem:[#allocation2 + $0x1]]  ;;  %v73_v0 = vld [vmem:[#allocation6] sm:$0xff]  ;;  %v78_v1 = vld [vmem:[#allocation7] sm:$0xff]  ;;  %v74_v2 = vld [vmem:[#allocation6 + $0x8] sm:$0xff] }
  0x43   :  { %s114_s12 = sld [smem:[#allocation2 + $0x2]]  ;;  %v85_v3 = vld [vmem:[#allocation9] sm:$0xff]  ;;  %v79_v4 = vld [vmem:[#allocation7 + $0x8] sm:$0xff]  ;;  %v86_v5 = vld [vmem:[#allocation9 + $0x8] sm:$0xff]  ;;  %s234_s3 = smov [#allocation10]  }
  0x44   :  { %s99_s13 = sshll.u32 %s234_s3, 4  ;;  %s100_s13 = int_to_ptr.vmem [resolvable:$true] %s99_s13 }
  0x45   :  { %s198_s14 = scalar_lea.vmem %s100_s13, 256  ;;  %p203_p0 = scmp.lt.s32.totalorder %s100_s13, %s100_s13 }
  0x46   :  { %p199_p13 = scmp.ne.s32.totalorder %s100_s13, %s198_s14  ;;  %p204_p1 = scmp.lt.s32.totalorder %s198_s14, %s198_s14 }
  0x48   :  { %v75_v6 = vstv %s70_s10  ;;  %v80_v7 = vstv %s113_s11  ;;  %p205_p2 = por %p204_p1, %p203_p0 }
  0x49   :  { %v76_v8 = vmul.f32 %v75_v6, %v73_v0  ;;  %v81_v9 = vmul.f32 %v80_v7, %v78_v1  ;;  %v87_v10 = vstv %s114_s12  ;;  %v77_v11 = vmul.f32 %v75_v6, %v74_v2 }
  0x4a   :  { %v88_v12 = vmul.f32 %v87_v10, %v85_v3  ;;  %v82_v13 = vmul.f32 %v80_v7, %v79_v4  ;;  %v89_v14 = vmul.f32 %v87_v10, %v86_v5  ;;  %p206_p3 = pnand %p205_p2, %p199_p13 }
  0x4b   :  { %v83_v15 = vadd.f32 %v81_v9, %v76_v8 }
  0x4c   :  { %v84_v16 = vadd.f32 %v82_v13, %v77_v11 }
  0x4d   :  { %v90_v17 = vadd.f32 %v88_v12, %v83_v15 }
  0x4e   :  { %v91_v18 = vadd.f32 %v89_v14, %v84_v16 }
  0x4f   :  { %92 = vst [vmem:[#allocation10] sm:$0xff] %v90_v17 }
  0x50   :  { %93 = vst [vmem:[#allocation10 + $0x8] sm:$0xff] %v91_v18 }
  0x51   :  { %209 = shalt.err (!%p206_p3)
}
  0x52   :  { %s210_s16 = scalar_lea.hbm %s336_s4, 256 }
  0x53   :  { %p211_p4 = scmp.ne.s32.totalorder %s336_s4, %s210_s16  ;;  %p214_p5 = scmp.lt.u32.totalorder %s210_s16, %s336_s4 }
  0x55   :  { %p216_p6 = pnand %p214_p5, %p211_p4 }
  0x57   :  { %219 = shalt.err (!%p216_p6)
}
  0x58   :  { %105 = dma.vmem_to_hbm [thread:$0]  %s100_s13, 256, %s336_s4, [#allocation4], %s230_s27, %s230_s27, %s231_s28  }
  0x59   :  { %226 = dma.done.wait [#allocation4], 256  }
  0x5a   :  { %227 = vsyncadd [#allocation4], 4294967040 }
  0x5b   :  { %109 = vsyncpa [#allocation3], 1 }
  0x5c   :  { %110 = vsyncpa [#allocation8], 1 }
  0x5d   :  { %111 = vsyncpa [#allocation4], 1 }
  0x5e   :  { %112 = vsyncpa [#allocation5], 1 }

</bundles_post_ra>
